<compile_context>
chip_gen: v6e
topology: v6e:2x2x1
jax: 0.10.0
libtpu: 0.0.40
codegen_flags: <defaults>
</compile_context>

<pallas_src>
import functools
import math

import jax
import jax.numpy as jnp
from jax.experimental import pallas as pl
from jax.experimental.pallas import tpu as pltpu


def _round_up(a, b):
    return ((a + b - 1) // b) * b


def _arc_margin_kernel(x_ref, w_ref, tgt_ref, out_ref, wn_ref, *,
                       s, s_cos_m, s_sin_m, s_cos_hi, cos_hi, cos_hi_minus_m):
    j = pl.program_id(0)            # class tile (outer, "parallel")
    i = pl.program_id(1)            # batch tile (inner, "arbitrary": carries wn_ref)
    tb, tc = out_ref.shape

    # Normalize this class tile's weight columns ONCE per class tile (first batch tile) and
    # cache the normalized matmul-dtype tile in VMEM scratch: the raw weight is read from HBM
    # exactly once per forward and no normalized HBM temp is materialized.
    @pl.when(i == 0)
    def _():
        w = w_ref[...].astype(jnp.float32)
        ss = jnp.sum(w * w, axis=0, keepdims=True)                     # (1, tc)
        # 1 / max(||w||, 1e-12)  ==  rsqrt(max(||w||^2, 1e-24))
        wn_ref[...] = (w * jax.lax.rsqrt(jnp.maximum(ss, 1e-24))).astype(wn_ref.dtype)

    # Cosine similarities on the MXU (f32 accumulate).
    cos_t = jnp.dot(x_ref[...], wn_ref[...], preferred_element_type=jnp.float32)
    cos_t = jnp.minimum(cos_t, 1.0)     # reference clips cos before acos; keeps bf16 path exact

    # One-hot of the targets inside this class tile: lane id == (target - class-tile offset).
    # The class offset is folded into the (tb, 1) target operand, not a (tb, tc) tile op.
    row_t = tgt_ref[pl.ds(pl.multiple_of(i * tb, tb), tb), :] - j * tc          # (tb, 1)
    mask = jax.lax.broadcasted_iota(jnp.int32, (tb, tc), 1) == row_t            # (tb, tc)

    # logits = s * cos(theta + m*onehot), acos-free:
    #   cos(theta + m) = cos*cos(m) - sin*sin(m),  sin = sqrt(1 - cos^2)   (sqrt rides the EUP)
    # s is folded into the constants so there is no trailing full-tile `* s`.
    sin_t = jnp.sqrt(jnp.maximum(1.0 - cos_t * cos_t, 0.0))
    val = cos_t * jnp.where(mask, s_cos_m, s) - sin_t * jnp.where(mask, s_sin_m, 0.0)

    # clamp(theta_m, 1e-5, 3.14159) in cos-space.  Upper clamp:
    #   theta_m > HI  <=>  cos_t < cos(HI - m*onehot)   ->  result s*cos(HI)
    val = jnp.where(cos_t < jnp.where(mask, cos_hi_minus_m, cos_hi), s_cos_hi, val)
    # Lower clamp (theta_m < 1e-5) is a provable no-op: cos_t <= 1.0 and m >= 1e-5 (asserted).

    out_ref[...] = val.astype(out_ref.dtype)


def arc_margin_head_forward(x, weight, targets, *, s=64.0, m=0.5,
                            tile_b=512, tile_c=1024,
                            matmul_dtype=jnp.bfloat16,
                            out_dtype=jnp.bfloat16,
                            vmem_budget_bytes=44 << 20):
    """Training-mode ArcMarginHead forward.

    x:(B, D) float, weight:(D, C) float (raw, un-normalized), targets:(B,) int
      -> logits (B, C) of `out_dtype`.
    """
    B, D = x.shape
    Dw, C = weight.shape
    assert D == Dw
    LO, HI = 1e-05, 3.14159
    # TODO(synk): the eval-mode branch of the PyTorch module (plain normalized matmul, no
    # margin/scale) is not implemented; this kernel covers the training forward only.
    assert m >= LO, "kernel assumes margin m >= 1e-5 (lower theta clamp folded away)"

    # --- tile sizes: lane-dense class tiles, sublane-aligned batch tiles -----------------
    tc = min(tile_c, _round_up(C, 128))
    tb = min(tile_b, _round_up(B, 16))
    assert tc % 128 == 0 and tb % 16 == 0

    w_isz = jnp.dtype(weight.dtype).itemsize
    m_isz = jnp.dtype(matmul_dtype).itemsize
    o_isz = jnp.dtype(out_dtype).itemsize

    def footprint(tb_, tc_):
        bp_ = _round_up(B, tb_)
        return (2 * D * tc_ * w_isz            # raw W tile (double-buffered)
                + D * tc_ * m_isz              # normalized-W VMEM cache
                + 2 * tb_ * D * m_isz          # x tile (double-buffered)
                + 2 * tb_ * tc_ * o_isz        # logits tile (double-buffered)
                + 2 * bp_ * 128 * 4)           # resident targets (lane-padded)

    # Auto-fit the tile footprint to a budget that also fits v7x's 64 MiB VMEM.  Shrink the
    # class tile first: the W tile's second buffer is mostly idle (block index constant over
    # the inner batch axis), so tc is the cheaper dimension to give back.
    while footprint(tb, tc) > vmem_budget_bytes and tc > 512:
        tc = max(512, _round_up(tc // 2, 128))
    while footprint(tb, tc) > vmem_budget_bytes and tb > 128:
        tb = max(128, _round_up(tb // 2, 16))

    # --- feature normalization hoisted (x is tiny); the weight streams RAW into the kernel ---
    xf = x.astype(jnp.float32)
    xn = xf / jnp.maximum(jnp.sqrt(jnp.sum(xf * xf, axis=1, keepdims=True)), 1e-12)
    xn = xn.astype(matmul_dtype)

    tgt = targets.astype(jnp.int32).reshape(-1, 1)
    Bp = _round_up(B, tb)
    if Bp != B:   # pad only the tiny per-row operands; W / logits are never padded or sliced
        xn = jnp.pad(xn, ((0, Bp - B), (0, 0)))
        tgt = jnp.pad(tgt, ((0, Bp - B), (0, 0)), constant_values=-1)

    # Class tiles outer -> the W tile (dominant DMA stream) stays resident across batch tiles.
    grid = (pl.cdiv(C, tc), Bp // tb)

    kernel = functools.partial(
        _arc_margin_kernel,
        s=float(s),
        s_cos_m=float(s) * math.cos(m),
        s_sin_m=float(s) * math.sin(m),
        s_cos_hi=float(s) * math.cos(HI),
        cos_hi=math.cos(HI),
        cos_hi_minus_m=math.cos(HI - m),
    )

    vmem_limit = int(max(footprint(tb, tc) + (6 << 20), 32 << 20))

    return pl.pallas_call(
        kernel,
        out_shape=jax.ShapeDtypeStruct((B, C), out_dtype),
        grid=grid,
        in_specs=[
            pl.BlockSpec((tb, D), lambda j, i: (i, 0)),    # x tile (tiny, re-streamed)
            pl.BlockSpec((D, tc), lambda j, i: (0, j)),    # raw W tile, resident over batch axis
            pl.BlockSpec((Bp, 1), lambda j, i: (0, 0)),    # targets, resident for the whole grid
        ],
        out_specs=pl.BlockSpec((tb, tc), lambda j, i: (i, j)),
        scratch_shapes=[pltpu.VMEM((D, tc), matmul_dtype)],   # normalized-W cache
        compiler_params=pltpu.CompilerParams(
            # class axis "parallel" (megacore shards classes -> per-TC weight traffic halves),
            # batch axis "arbitrary" (it carries the normalized-W scratch).
            dimension_semantics=("parallel", "arbitrary"),
            vmem_limit_bytes=vmem_limit),
    )(xn, weight, tgt)


def _reference(x, weight, targets, s=64.0, m=0.5):
    """Pure-JAX reference mirroring the PyTorch training forward."""
    w = weight / jnp.maximum(jnp.linalg.norm(weight, axis=0, keepdims=True), 1e-12)
    xn = x / jnp.maximum(jnp.linalg.norm(x, axis=1, keepdims=True), 1e-12)
    cos_t = xn @ w
    onehot = jax.nn.one_hot(targets, weight.shape[1], dtype=cos_t.dtype)
    theta_m = jnp.arccos(jnp.clip(cos_t, -1.0, 1.0)) + m * onehot
    theta_m = jnp.clip(theta_m, 1e-05, 3.14159)
    return s * jnp.cos(theta_m)


if __name__ == "__main__":
    key = jax.random.PRNGKey(0)
    kx, kw, kt = jax.random.split(key, 3)

    # Small shapes consistent with the module: batch=32, in_channels(feat_dim)=32, class_num=512.
    B, D, C = 32, 32, 512
    # kaiming_normal_ on weight.t() (shape (C, D), fan_in = D) => std = sqrt(2 / D)
    weight = jax.random.normal(kw, (D, C), dtype=jnp.float32) * math.sqrt(2.0 / D)
    x = jax.random.normal(kx, (B, D), dtype=jnp.float32)
    targets = jax.random.randint(kt, (B,), 0, C, dtype=jnp.int32)
    ref = _reference(x, weight, targets, s=64.0, m=0.5)

    # 1) f32 strict-check path, divisible tiling (grid (4, 2)): exercises class tiling,
    #    batch tiling, the resident targets slice and the in-kernel weight normalization.
    out_f32 = arc_margin_head_forward(x, weight, targets, s=64.0, m=0.5,
                                      tile_b=16, tile_c=128,
                                      matmul_dtype=jnp.float32, out_dtype=jnp.float32)
    out_f32 = jax.block_until_ready(out_f32)
    assert out_f32.shape == (B, C) and out_f32.dtype == jnp.float32
    assert bool(jnp.allclose(out_f32, ref, atol=2e-3, rtol=1e-4))

    # 2) Ragged batch and class tiles (B=30, C=400): masked output stores / clipped loads,
    #    no weight padding, no output slice.  Strict f32 numerics.
    Br, Cr = 30, 400
    xr, wr = x[:Br], weight[:, :Cr]
    tr = jnp.clip(targets[:Br], 0, Cr - 1)
    ref_r = _reference(xr, wr, tr, s=64.0, m=0.5)
    out_r = arc_margin_head_forward(xr, wr, tr, s=64.0, m=0.5,
                                    tile_b=16, tile_c=128,
                                    matmul_dtype=jnp.float32, out_dtype=jnp.float32)
    out_r = jax.block_until_ready(out_r)
    assert out_r.shape == (Br, Cr)
    assert bool(jnp.allclose(out_r, ref_r, atol=2e-3, rtol=1e-4))

    # 3) Production defaults: bf16 operand streaming + bf16 logits (tiles clamp to the shape).
    #    Looser tolerance on the s=64-scaled logits.
    out_bf16 = arc_margin_head_forward(x, weight, targets, s=64.0, m=0.5)
    out_bf16 = jax.block_until_ready(out_bf16)
    assert out_bf16.shape == (B, C) and out_bf16.dtype == jnp.bfloat16
    assert bool(jnp.allclose(out_bf16.astype(jnp.float32), ref, atol=1.0))

    print("KERNEL_OK")
</pallas_src>

<mosaic_0001>
module attributes {stable_mosaic.version = 11 : i64} {
  func.func @_arc_margin_kernel(%arg0: i32, %arg1: i32, %arg2: memref<16x32xf32, #tpu.memory_space<vmem>>, %arg3: memref<32x128xf32, #tpu.memory_space<vmem>>, %arg4: memref<32x1xi32, #tpu.memory_space<vmem>>, %arg5: memref<16x128xf32, #tpu.memory_space<vmem>>, %arg6: memref<32x128xf32, #tpu.memory_space<vmem>>) attributes {dimension_semantics = [#tpu.dimension_semantics<parallel>, #tpu.dimension_semantics<arbitrary>], iteration_bounds = array<i64: 4, 2>, scalar_prefetch = 0 : i64, scratch_operands = 1 : i64, tpu.core_type = #tpu.core_type<tc>, window_params = [{transform_indices = @transform_0, window_bounds = array<i64: 16, 32>}, {transform_indices = @transform_1, window_bounds = array<i64: 32, 128>}, {pipeline_mode = #tpu.pipeline_mode<synchronous>, transform_indices = @transform_2, window_bounds = array<i64: 32, 1>}, {transform_indices = @transform_3, window_bounds = array<i64: 16, 128>}]} {
    %c0_i32 = arith.constant 0 : i32
    %0 = arith.cmpi eq, %arg1, %c0_i32 : i32
    %1 = arith.extui %0 : i1 to i32
    %c0_i32_0 = arith.constant 0 : i32
    %2 = arith.cmpi ne, %1, %c0_i32_0 : i32
    scf.if %2 {
      %c0_17 = arith.constant 0 : index
      %c0_18 = arith.constant 0 : index
      %40 = vector.load %arg3[%c0_17, %c0_18] : memref<32x128xf32, #tpu.memory_space<vmem>>, vector<32x128xf32>
      %41 = arith.mulf %40, %40 : vector<32x128xf32>
      %cst_19 = arith.constant dense<0.000000e+00> : vector<128xf32>
      %42 = vector.multi_reduction <add>, %41, %cst_19 [0] : vector<32x128xf32> to vector<128xf32>
      %43 = vector.shape_cast %42 : vector<128xf32> to vector<1x128xf32>
      %cst_20 = arith.constant 1.000000e-24 : f32
      %44 = vector.broadcast %cst_20 : f32 to vector<1x128xf32>
      %45 = arith.maximumf %43, %44 : vector<1x128xf32>
      %46 = math.rsqrt %45 : vector<1x128xf32>
      %47 = vector.broadcast %46 : vector<1x128xf32> to vector<32x128xf32>
      %48 = arith.mulf %40, %47 : vector<32x128xf32>
      %c0_21 = arith.constant 0 : index
      %c0_22 = arith.constant 0 : index
      %49 = vector.load %arg6[%c0_21, %c0_22] : memref<32x128xf32, #tpu.memory_space<vmem>>, vector<32x128xf32>
      tpu.vector_store %arg6[%c0_21, %c0_22], %48 {strides = array<i32>} : memref<32x128xf32, #tpu.memory_space<vmem>>, vector<32x128xf32>,
    } else {
    }
    %c0 = arith.constant 0 : index
    %c0_1 = arith.constant 0 : index
    %3 = vector.load %arg2[%c0, %c0_1] : memref<16x32xf32, #tpu.memory_space<vmem>>, vector<16x32xf32>
    %c0_2 = arith.constant 0 : index
    %c0_3 = arith.constant 0 : index
    %4 = vector.load %arg6[%c0_2, %c0_3] : memref<32x128xf32, #tpu.memory_space<vmem>>, vector<32x128xf32>
    %cst = arith.constant dense<0.000000e+00> : vector<16x128xf32>
    %5 = tpu.matmul %3, %4, %cst {dimension_numbers = #tpu.dot_dimension_numbers<[1], [0], [0], [1], [0, 0, 1, 1], [], []>} : vector<16x32xf32>, vector<32x128xf32>, vector<16x128xf32> -> vector<16x128xf32>
    %cst_4 = arith.constant 1.000000e+00 : f32
    %6 = vector.broadcast %cst_4 : f32 to vector<16x128xf32>
    %7 = arith.minimumf %5, %6 : vector<16x128xf32>
    %c16_i32 = arith.constant 16 : i32
    %8 = arith.muli %arg1, %c16_i32 : i32
    %9 = tpu.assume_multiple %8, 16 : i32
    %10 = arith.index_cast %9 : i32 to index
    %c0_5 = arith.constant 0 : index
    %11 = vector.load %arg4[%10, %c0_5] : memref<32x1xi32, #tpu.memory_space<vmem>>, vector<16x1xi32>
    %c128_i32 = arith.constant 128 : i32
    %12 = arith.muli %arg0, %c128_i32 : i32
    %13 = vector.broadcast %12 : i32 to vector<16x1xi32>
    %14 = arith.subi %11, %13 : vector<16x1xi32>
    %15 = tpu.iota {dimensions = array<i32: 1>} : vector<16x128xi32>
    %16 = vector.broadcast %14 : vector<16x1xi32> to vector<16x128xi32>
    %17 = arith.cmpi eq, %15, %16 : vector<16x128xi32>
    %18 = arith.mulf %7, %7 : vector<16x128xf32>
    %cst_6 = arith.constant 1.000000e+00 : f32
    %19 = vector.broadcast %cst_6 : f32 to vector<16x128xf32>
    %20 = arith.subf %19, %18 : vector<16x128xf32>
    %cst_7 = arith.constant 0.000000e+00 : f32
    %21 = vector.broadcast %cst_7 : f32 to vector<16x128xf32>
    %22 = arith.maximumf %20, %21 : vector<16x128xf32>
    %23 = math.sqrt %22 : vector<16x128xf32>
    %cst_8 = arith.constant 56.1652832 : f32
    %cst_9 = arith.constant 6.400000e+01 : f32
    %24 = vector.broadcast %cst_8 : f32 to vector<16x128xf32>
    %25 = vector.broadcast %cst_9 : f32 to vector<16x128xf32>
    %26 = arith.select %17, %24, %25 : vector<16x128xi1>, vector<16x128xf32>
    %27 = arith.mulf %7, %26 : vector<16x128xf32>
    %cst_10 = arith.constant 30.6832352 : f32
    %cst_11 = arith.constant 0.000000e+00 : f32
    %28 = vector.broadcast %cst_10 : f32 to vector<16x128xf32>
    %29 = vector.broadcast %cst_11 : f32 to vector<16x128xf32>
    %30 = arith.select %17, %28, %29 : vector<16x128xi1>, vector<16x128xf32>
    %31 = arith.mulf %23, %30 : vector<16x128xf32>
    %32 = arith.subf %27, %31 : vector<16x128xf32>
    %cst_12 = arith.constant -0.877581298 : f32
    %cst_13 = arith.constant -1.000000e+00 : f32
    %33 = vector.broadcast %cst_12 : f32 to vector<16x128xf32>
    %34 = vector.broadcast %cst_13 : f32 to vector<16x128xf32>
    %35 = arith.select %17, %33, %34 : vector<16x128xi1>, vector<16x128xf32>
    %36 = arith.cmpf olt, %7, %35 : vector<16x128xf32>
    %cst_14 = arith.constant -6.400000e+01 : f32
    %37 = vector.broadcast %cst_14 : f32 to vector<16x128xf32>
    %38 = arith.select %36, %37, %32 : vector<16x128xi1>, vector<16x128xf32>
    %c0_15 = arith.constant 0 : index
    %c0_16 = arith.constant 0 : index
    %39 = vector.load %arg5[%c0_15, %c0_16] : memref<16x128xf32, #tpu.memory_space<vmem>>, vector<16x128xf32>
    tpu.vector_store %arg5[%c0_15, %c0_16], %38 {strides = array<i32>} : memref<16x128xf32, #tpu.memory_space<vmem>>, vector<16x128xf32>,
    return
  }
  func.func @transform_0(%arg0: i32, %arg1: i32) -> (i32, i32) {
    %c0_i32 = arith.constant 0 : i32
    %c0_i32_0 = arith.constant 0 : i32
    return %arg1, %c0_i32 : i32, i32
  }
  func.func @transform_1(%arg0: i32, %arg1: i32) -> (i32, i32) {
    %c0_i32 = arith.constant 0 : i32
    %c0_i32_0 = arith.constant 0 : i32
    return %c0_i32, %arg0 : i32, i32
  }
  func.func @transform_2(%arg0: i32, %arg1: i32) -> (i32, i32) {
    %c0_i32 = arith.constant 0 : i32
    %c0_i32_0 = arith.constant 0 : i32
    %c0_i32_1 = arith.constant 0 : i32
    return %c0_i32, %c0_i32_0 : i32, i32
  }
  func.func @transform_3(%arg0: i32, %arg1: i32) -> (i32, i32) {
    %c0_i32 = arith.constant 0 : i32
    return %arg1, %arg0 : i32, i32
  }
}

</mosaic_0001>

<bundles_post_ra>
// kernel: tpu_custom_call.1
= control target key start
LH: loop header
LB: loop body
LE: loop exit
PB: predicated region body
PF: predicated region fallthrough
CT: control target
= control target key end

     0   :  { %8 = vsyncpa [#allocation4], 0  ;;  %s1081_s0 = inlined_call_operand.vmem [shape: f32[32,32], index: 0, kind: input, shape index: {}]   ;;  %s1082_s1 = inlined_call_operand.hbm [shape: f32[32,512], index: 1, kind: input, shape index: {}]   ;;  %s1083_s2 = inlined_call_operand.vmem [shape: s32[32,1], index: 2, kind: input, shape index: {}]   ;;  %s1084_s3 = inlined_call_operand.hbm [shape: f32[32,512], index: 3, kind: output, shape index: {}]  }
   0x1   :  { %10 = vsyncpa [#allocation4 + $0x1], 0 }
   0x2   :  { %11 = vsyncpa [#allocation5], 0 }
   0x3   :  { %13 = vsyncpa [#allocation5 + $0x1], 0  ;;  %s859_s12 = smov 0   ;;  %s861_s13 = smov 0  }
   0x4   :  { %s863_s14 = smov 0   ;;  %s865_s15 = smov 0  }
   0x5   :  { %s867_s16 = smov 0   ;;  %s869_s17 = smov 0  }
   0x6   :  { %s871_s18 = smov 0   ;;  %s873_s19 = smov 0  }
   0x7   :  { %s875_s20 = smov 0   ;;  %s877_s21 = smov 0  }
   0x8   :  { %s879_s22 = smov 0  }
   0x9 LB: > { %1089 = sst [smem:[#allocation9_spill]] %s817_s20  ;;  %s518_s23 = sadd.s32 4294967295, %s825_s22   ;;  %s825_s22 = sphi %s879_s22, %s19_s22   ;;  %s821_s21 = sphi %s877_s21, %s1101_s21   ;;  %s817_s20 = sphi %s875_s20, %s1100_s20   ;;  %s813_s19 = sphi %s873_s19, %s1099_s19   ;;  %s809_s18 = sphi %s871_s18, %s1098_s18   ;;  %s805_s17 = sphi %s869_s17, %s1107_s17   ;;  %s801_s16 = sphi %s867_s16, %s1106_s16   ;;  %s797_s15 = sphi %s865_s15, %s1105_s15   ;;  %s793_s14 = sphi %s863_s14, %s1104_s14   ;;  %s789_s13 = sphi %s861_s13, %s1103_s13   ;;  %s785_s12 = sphi %s859_s12, %s1102_s12  }
   0xa   : > { %1090 = sst [smem:[#allocation10_spill]] %s821_s21  ;;  %s519_s24 = sadd.s32 4294967294, %s825_s22  }
   0xb   : > { %s28_s25 = sadd.s32 1, %s817_s20  ;;  %s31_s26 = sadd.s32 1, %s821_s21 }
   0xc   : > { %p29_p0 = scmp.ge.s32.totalorder %s28_s25, 2  ;;  %s64_s27 = sadd.s32 1, %s805_s17 }
   0xd   : > { %p71_p1 = scmp.ne.s32.totalorder %s805_s17, %s801_s16  ;;  %p72_p2 = scmp.eq.s32.totalorder %s825_s22, 0 }
   0xe   : > { %s1109_s25 = smov (%p29_p0, %s28_s25), 0  ;;  %s1111_s26 = smov (!%p29_p0, %s31_s26), %s821_s21 }
   0xf   : > { %1091 = sst [smem:[#allocation11_spill]] %s1109_s25  ;;  %p923_p3 = por %p72_p2, %p71_p1 }
  0x10   : > { %p77_p4 = scmp.ne.s32.totalorder %s801_s16, %s797_s15  ;;  %p33_p5 = scmp.ge.s32.totalorder %s1111_s26, 4 }
  0x11   : > { %p78_p6 = scmp.eq.s32.totalorder %s518_s23, 0  ;;  %s108_s29 = ssub.s32 %s817_s20, %s1109_s25 }
  0x12   : > { %s113_s30 = sadd.s32 1, %s793_s14  ;;  %s1113_s26 = smov (%p33_p5, %s1111_s26), 0 }
  0x13   : > { %1093 = sst [smem:[#allocation12_spill]] %s1113_s26  ;;  %p933_p7 = por %p78_p6, %p77_p4 }
  0x14   : > { %p123_p8 = scmp.ne.s32.totalorder %s793_s14, %s789_s13  ;;  %s61_s5 = ssub.s32 %s821_s21, %s1113_s26 }
  0x15   : > { %p124_p9 = scmp.eq.s32.totalorder %s518_s23, 7  ;;  %p62_p10 = scmp.eq.s32.totalorder %s61_s5, 0 }
  0x16   : > { %s110_s6 = sor.u32 %s108_s29, %s61_s5  ;;  %p129_p13 = scmp.ne.s32.totalorder %s789_s13, %s785_s12 }
  0x17   : > { %p111_p11 = scmp.eq.s32.totalorder %s110_s6, 0  ;;  %p941_p12 = por %p124_p9, %p123_p8 }
  0x18   : > { %s946_s8 = scalar_select %p62_p10, %s805_s17, %s64_s27  }
  0x19   : > { %s949_s9 = scalar_select %p111_p11, %s793_s14, %s113_s30  }
  0x1a   : > { %p130_p0 = scmp.eq.s32.totalorder %s519_s24, 7  ;;  %p570_p1 = scmp.lt.s32.totalorder %s825_s22, 8 }
  0x1b   : > { %s162_s11 = sand.u32 1, %s805_s17   ;;  %s523_s23 = sshll.u32 %s821_s21, 7 }
  0x1c   : > { %p954_p2 = por %p130_p0, %p129_p13  ;;  %s522_s15 = sshll.u32 %s162_s11, 5 }
  0x1d   : > { %s171_s6 = scalar_lea.hbm %s1082_s1, %s523_s23  ;;  %s166_s26 = scalar_lea.vmem [#allocation3], %s522_s15 }
  0x1e   : > { %s172_s25 = sshll.u32 %s166_s26, 4  ;;  %p965_p4 = pnand %p570_p1, %p923_p3  ;;  %s173_s25 = int_to_ptr.vmem [resolvable:$true] %s172_s25 }
  0x1f   : > { %s163_s24 = scalar_lea.sflag [#allocation4], %s162_s11  ;;  %s690_s30 = scalar_lea.vmem %s173_s25, 512 }
  0x20   : > { %p679_p5 = pneg %p965_p4  ;;  %p691_p6 = scmp.ne.s32.totalorder %s173_s25, %s690_s30 }
  0x21   : > { %s827_s21 = smov [#allocation3]  }
  0x22   : > { %p693_p8 = pnand %p691_p6, %p679_p5  ;;  %s695_s20 = sshll.u32 %s827_s21, 4  ;;  %s696_s20 = int_to_ptr.vmem [resolvable:$false] %s695_s20 }
  0x23   : > { %s697_s23 = scalar_lea.vmem %s696_s20, 1024  ;;  %p698_p10 = scmp.lt.s32.totalorder %s173_s25, %s696_s20 }
  0x24   : > { %p694_p9 = pneg %p693_p8  ;;  %p699_p11 = scmp.lt.s32.totalorder %s697_s23, %s690_s30 }
  0x26   : > { %p700_p13 = por %p699_p11, %p698_p10 }
  0x28   : > { %p701_p0 = pnand %p700_p13, %p694_p9 }
  0x2a   : > { %704 = shalt.err (!%p701_p0)
}
  0x2b   : > { %s828_s26 = smov 512   ;;  %s829_s28 = smov 128  }
  0x2c   : > { %s830_s11 = smov 8   ;;  %p524_p3 = scmp.ge.s32.totalorder %s825_s22, 1 }
  0x2d   : > { %565 = dma.hbm_to_vmem [thread:$0]  (!%p965_p4), %s171_s6, 512, %s173_s25, %s163_s24, %s828_s26, %s829_s28, %s830_s11  }
  0x2e   : > { %p180_p1 = scmp.lt.s32.totalorder %s825_s22, 9 }
  0x30   : > { %p181_p5 = pnand %p524_p3, %p180_p1 }
  0x31   : > { %s186_s21 = sand.u32 (!%p181_p5), 1, %s801_s16  }
  0x32   : > { %184 = sbr.rel (%p181_p5) target bundleno = 362 (0x16a), region = 32  ;;  %s525_s20 = sshll.u32 (!%p181_p5), %s186_s21, 5 }
  0x33   : > { %s187_s15 = scalar_lea.sflag (!%p181_p5), [#allocation4], %s186_s21  ;;  %s190_s29 = scalar_lea.vmem (!%p181_p5), [#allocation3], %s525_s20 }
  0x37   : > { %776 = dma.done.wait (%p933_p7), %s187_s15, 512  }
  0x38   : > { %778 = vsyncadd (%p933_p7), %s187_s15, 4294966784  ;;  %s215_s5 = sand.u32 1, %s789_s13   ;;  %s527_s25 = sshll.u32 %s809_s18, 1 }
  0x39   : > { %s526_s6 = sshll.u32 %s215_s5, 4  ;;  %p219_p4 = scmp.lt.s32.totalorder %s527_s25, 3 }
  0x3a   : > { %s989_s26 = scalar_lea.vmem [#allocation6], %s526_s6  ;;  %p529_p6 = scmp.ne.s32.totalorder %s809_s18, 0 }
  0x3b   : > { %s1115_s25 = smov (!%p219_p4, %s527_s25), 3 }
  0x3c   : > { %s528_s27 = sshll.u32 %s1115_s25, 3  ;;  %228 = sbr.rel (%p529_p6) target bundleno = 106 (0x6a), region = 40 }
  0x3d   : > { %s987_s23 = scalar_lea.vmem %s1081_s0, %s528_s27 }
  0x41   : > { %v229_v0 = vld [vmem:[%s190_s29] sm:$0xff]  ;;  %v230_v1 = vld [vmem:[%s190_s29 + $0x8] sm:$0xff]  ;;  %v231_v2 = vld [vmem:[%s190_s29 + $0x10] sm:$0xff] }
  0x42   : > { %v232_v3 = vld [vmem:[%s190_s29 + $0x18] sm:$0xff]  ;;  %v233_v4 = vmul.f32 %v229_v0, %v229_v0  ;;  %v234_v5 = vmul.f32 %v230_v1, %v230_v1  ;;  %v235_v6 = vmul.f32 %v231_v2, %v231_v2 }
  0x43   : > { %v236_v7 = vmul.f32 %v232_v3, %v232_v3 }
  0x44   : > { %v237_v8 = vadd.f32 %v234_v5, %v233_v4 }
  0x46   : > { %v238_v9 = vadd.f32 %v237_v8, %v235_v6 }
  0x48   : > { %v239_v10 = vadd.f32 %v238_v9, %v236_v7 }
  0x4a   : > { %v240_v11 = vrot.slane %v239_v10, 4 }
  0x4c   : > { %v241_v12 = vadd.f32 %v240_v11, %v239_v10 }
  0x4e   : > { %v242_v13 = vrot.slane %v241_v12, 2 }
  0x50   : > { %v243_v14 = vadd.f32 %v242_v13, %v241_v12 }
  0x52   : > { %v244_v15 = vrot.slane %v243_v14, 1 }
  0x54   : > { %v245_v16 = vadd.f32 %v244_v15, %v243_v14 }
  0x56   : > { %v246_v17 = vmax.f32 %v245_v16, 1e-24 }
  0x58   : > { %670 = vrsqrt.f32 %v246_v17 }
  0x65   : > { %v671_v18 = vpop.eup %670 }
  0x66   : > { %v248_v19 = vmul.f32 %v671_v18, %v229_v0  ;;  %v249_v20 = vmul.f32 %v671_v18, %v230_v1  ;;  %v250_v21 = vmul.f32 %v671_v18, %v231_v2  ;;  %v251_v22 = vmul.f32 %v671_v18, %v232_v3 }
  0x68   : > { %252 = vst [vmem:[#allocation2 + $0x10] sm:$0xff] %v248_v19  ;;  %253 = vst [vmem:[#allocation2] sm:$0xff] %v249_v20 }
  0x69   : > { %254 = vst [vmem:[#allocation2 + $0x18] sm:$0xff] %v250_v21  ;;  %255 = vst [vmem:[#allocation2 + $0x8] sm:$0xff] %v251_v22 }
  0x6a PF: > { %vm262_vm0 = vcmask 261120   ;;  %s532_s4 = sshll.u32 %s809_s18, 4  ;;  %v256_v25 = vld [vmem:[%s987_s23] sm:$0xff]  ;;  %v831_v26 = vmov 0   ;;  %s533_s20 = sshll.u32 %s813_s19, 7  ;;  %v257_v34 = vld [vmem:[%s987_s23 + $0x8] sm:$0xff]  ;;  %v354_v46 = vlaneseq }
  0x6b   : > { %672 = vset.pattern.permute.xlu0 %v831_v26  ;;  %s347_s21 = scalar_lea.vmem %s1083_s2, %s532_s4  ;;  %555 = vmatprep.mubr.msk.f32.mxu0 %vm262_vm0, %v256_v25  ;;  %v351_v30 = vstv %s533_s20  ;;  %s540_s15 = sshll.u32 %s809_s18, 3  ;;  %v832_v51 = vmov 64.0   ;;  %v833_v57 = vmov 0.0   ;;  %v834_v59 = vmov -1.0  }
  0x6c   : > { %v348_v28 = vld [vmem:[%s347_s21] sm:$0xff]  ;;  %v349_v29 = vld [vmem:[%s347_s21 + $0x8] sm:$0xff]  ;;  %v355_v47 = vand.u32 127, %v354_v46  ;;  %s415_s29 = sadd.s32 %s813_s19, %s540_s15  ;;  %s418_s19 = sshll.u32 %s989_s26, 4  ;;  %s1016_s19 = int_to_ptr.vmem [resolvable:$true] %s418_s19 }
  0x6d   : > { %v352_v31 = vsub.s32 %v348_v28, %v351_v30  ;;  %v353_v33 = vsub.s32 %v349_v29, %v351_v30  ;;  %s537_s18 = sshll.u32 %s415_s29, 7  ;;  %s1021_s24 = scalar_lea.sflag [#allocation5], %s215_s5 }
  0x6e   : > { %s1013_s27 = scalar_lea.hbm %s1084_s3, %s537_s18  ;;  %s705_s30 = scalar_lea.vmem %s1016_s19, 256 }
  0x6f   : > { %v259_v27 = vld [vmem:[#allocation2] sm:$0xff]  ;;  %v258_v32 = vld [vmem:[#allocation2 + $0x10] sm:$0xff]  ;;  %357 = vperm.xlu0 %672, %v352_v31   ;;  %p706_p7 = scmp.ne.s32.totalorder %s1016_s19, %s705_s30  ;;  %s835_s23 = smov [#allocation6]  }
  0x70   : > { %v261_v23 = vld [vmem:[#allocation2 + $0x8] sm:$0xff]  ;;  %v260_v24 = vld [vmem:[#allocation2 + $0x18] sm:$0xff]  ;;  %s709_s4 = sshll.u32 %s835_s23, 4  ;;  %s710_s4 = int_to_ptr.vmem [resolvable:$false] %s709_s4 }
  0x71   : > { %547 = vmatprep.subr.mxu0 %v261_v23  ;;  %p707_p8 = pnand %p706_p7, %p941_p12  ;;  %s711_s28 = scalar_lea.vmem %s710_s4, 512 }
  0x72   : > { %548 = vmatpush3.msra.mxu0 %v261_v23  ;;  %p712_p10 = scmp.lt.s32.totalorder %s1016_s19, %s710_s4  ;;  %p713_p11 = scmp.lt.s32.totalorder %s711_s28, %s705_s30 }
  0x73   : > { %549 = vmatprep.subr.mxu0 %v260_v24  ;;  %360 = vperm.xlu0 %672, %v353_v33   ;;  %p708_p9 = pneg %p707_p8 }
  0x74   : > { %550 = vmatpush3.msra.mxu0 %v260_v24  ;;  %p714_p13 = por %p713_p11, %p712_p10 }
  0x75   : > { %551 = vmatprep.subr.mxu0 %v259_v27 }
  0x76   : > { %552 = vmatpush3.msra.mxu0 %v259_v27  ;;  %p715_p0 = pnand %p714_p13, %p708_p9 }
  0x77   : > { %553 = vmatprep.subr.mxu0 %v258_v32 }
  0x78   : > { %554 = vmatpush3.msra.mxu0 %v258_v32 }
  0x79   : > { %556 = vmatmul.mubr.msk.f32.vlgmr.msra.gmra.mxu0 %vm262_vm0, %v257_v34 }
  0xea   : > { %v358_v45 = vpop.permute.xlu0 %357 }
  0xeb   : > { %vm362_vm2 = vcmp.eq.s32.totalorder %v355_v47, %v358_v45 }
  0xec   : > { %v384_v55 = vsel %vm362_vm2, 56.165283, %v832_v51  ;;  %v388_v3 = vsel %vm362_vm2, 30.683235, %v833_v57  ;;  %v394_v6 = vsel %vm362_vm2, -0.8775813, %v834_v59 }
  0xee   : > { %v361_v48 = vpop.permute.xlu0 %360 }
  0xef   : > { %vm363_vm1 = vcmp.eq.s32.totalorder %v355_v47, %v361_v48 }
  0xf0   : > { %v385_v52 = vsel %vm363_vm1, 56.165283, %v832_v51  ;;  %v389_v58 = vsel %vm363_vm1, 30.683235, %v833_v57  ;;  %v395_v60 = vsel %vm363_vm1, -0.8775813, %v834_v59 }
 0x139   : > { %v557_v35 = vpop.f32.mrf.mxu0 }
 0x13a   : > { %v345_v36 = vmin.f32 %v557_v35, 1.0 }
 0x13b   : > { %v335_v37 = vpop.f32.mrf.mxu0 }
 0x13c   : > { %v365_v38 = vmul.f32 %v345_v36, %v345_v36  ;;  %v344_v39 = vmin.f32 %v335_v37, 1.0  ;;  %v387_v63 = vmul.f32 %v385_v52, %v345_v36  ;;  %vm397_vm7 = vcmp.lt.f32.partialorder %v345_v36, %v395_v60 }
 0x13e   : > { %v367_v40 = vsub.f32 1.0, %v365_v38  ;;  %v364_v41 = vmul.f32 %v344_v39, %v344_v39  ;;  %v386_v7 = vmul.f32 %v384_v55, %v344_v39  ;;  %vm396_vm8 = vcmp.lt.f32.partialorder %v344_v39, %v394_v6 }
 0x140   : > { %v369_v42 = vmax.f32 %v367_v40, 0.0  ;;  %v366_v43 = vsub.f32 1.0, %v364_v41 }
 0x142   : > { %673 = vrsqrt.f32 %v369_v42  ;;  %v368_v44 = vmax.f32 %v366_v43, 0.0  ;;  %vm379_vm3 = vcmp.eq.f32.partialorder %v369_v42, inf  ;;  %v382_v53 = vand.u32 2147483648, %v369_v42 }
 0x143   : > { %vm381_vm4 = vcmp.eq.f32.partialorder %v369_v42, 0.0 }
 0x144   : > { %675 = vrsqrt.f32 %v368_v44  ;;  %vm372_vm5 = vcmp.eq.f32.partialorder %v368_v44, inf  ;;  %v375_v1 = vand.u32 2147483648, %v368_v44  ;;  %vm374_vm6 = vcmp.eq.f32.partialorder %v368_v44, 0.0 }
 0x14f   : > { %v674_v49 = vpop.eup %673 }
 0x150   : > { %v378_v50 = vmul.f32 %v674_v49, %v369_v42 }
 0x151   : > { %v676_v54 = vpop.eup %675 }
 0x152   : > { %v380_v56 = vsel %vm379_vm3, %v369_v42, %v378_v50  ;;  %v371_v62 = vmul.f32 %v676_v54, %v368_v44 }
 0x153   : > { %v383_v61 = vsel %vm381_vm4, %v382_v53, %v380_v56 }
 0x154   : > { %v391_v0 = vmul.f32 %v389_v58, %v383_v61  ;;  %v373_v2 = vsel %vm372_vm5, %v368_v44, %v371_v62 }
 0x155   : > { %v376_v5 = vsel %vm374_vm6, %v375_v1, %v373_v2 }
 0x156   : > { %v393_v4 = vsub.f32 %v387_v63, %v391_v0  ;;  %v390_v8 = vmul.f32 %v388_v3, %v376_v5 }
 0x158   : > { %v399_v9 = vsel %vm397_vm7, -64.0, %v393_v4  ;;  %v392_v10 = vsub.f32 %v386_v7, %v390_v8 }
 0x159   : > { %401 = vst [vmem:[%s989_s26 + $0x8] sm:$0xff] %v399_v9 }
 0x15a   : > { %v398_v11 = vsel %vm396_vm8, -64.0, %v392_v10 }
 0x15b   : > { %400 = vst [vmem:[%s989_s26] sm:$0xff] %v398_v11 }
 0x15c   : > { %718 = shalt.err (!%p715_p0)
}
 0x15d   : > { %s719_s5 = scalar_lea.hbm %s1013_s27, 256  ;;  %s723_s21 = scalar_lea.hbm %s1084_s3, 2048 }
 0x15e   : > { %p720_p3 = scmp.ne.s32.totalorder %s1013_s27, %s719_s5  ;;  %p724_p4 = scmp.lt.s32.totalorder %s1013_s27, %s1084_s3 }
 0x15f   : > { %p725_p6 = scmp.lt.s32.totalorder %s723_s21, %s719_s5 }
 0x160   : > { %p721_p1 = pnand %p720_p3, %p941_p12 }
 0x161   : > { %p726_p7 = por %p725_p6, %p724_p4 }
 0x162   : > { %p722_p5 = pneg %p721_p1 }
 0x164   : > { %p727_p8 = pnand %p726_p7, %p722_p5 }
 0x166   : > { %730 = shalt.err (!%p727_p8)
}
 0x167   : > { %s836_s29 = smov 128   ;;  %s837_s18 = smov 512  }
 0x168   : > { %s838_s25 = smov 8  }
 0x169   : > { %560 = dma.vmem_to_hbm [thread:$0]  (%p941_p12), %s1016_s19, 256, %s1013_s27, %s1021_s24, %s836_s29, %s837_s18, %s838_s25  }
 0x16a PF: > { %p571_p9 = scmp.ge.s32.totalorder %s825_s22, 2  ;;  %s433_s6 = sand.u32 1, %s785_s12  }
 0x16b   : > { %s434_s30 = scalar_lea.sflag [#allocation5], %s433_s6 }
 0x16c   : > { %p567_p10 = pnand %p571_p9, %p954_p2 }
 0x16e   : > { %p568_p11 = pneg %p567_p10 }
 0x170   : > { %780 = dma.done.wait (%p568_p11), %s434_s30, 256  }
 0x171   : > { %782 = vsyncadd (%p568_p11), %s434_s30, 4294967040  ;;  %s19_s22 = sadd.s32 1, %s825_s22   ;;  %s1098_s18 = sld [smem:[#allocation9_spill]] }
 0x172   : > { %p16_p13 = scmp.ge.s32.totalorder %s19_s22, 10   ;;  %s1099_s19 = sld [smem:[#allocation10_spill]] }
 0x173   : > { %s1100_s20 = sld [smem:[#allocation11_spill]]  ;;  %s1102_s12 = smov %s789_s13 }
 0x174   : > { %s1101_s21 = sld [smem:[#allocation12_spill]]  ;;  %s1103_s13 = smov %s793_s14 }
 0x175   : > { %s1104_s14 = smov %s949_s9  ;;  %s1105_s15 = smov %s801_s16 }
 0x176   : > { %s1106_s16 = smov %s805_s17  ;;  %s1107_s17 = smov %s946_s8 }
 0x177   :  { %18 = sbr.rel (!%p16_p13) target bundleno = 9 (0x9), region = 85 }
 0x17c   :  { %439 = vsyncpa [#allocation4], 1 }
 0x17d   :  { %441 = vsyncpa [#allocation4 + $0x1], 1 }
 0x17e   :  { %442 = vsyncpa [#allocation5], 1 }
 0x17f   :  { %444 = vsyncpa [#allocation5 + $0x1], 1 }

</bundles_post_ra>
